<compile_context>
chip_gen: v7x
topology: tpu7x:2x2x1
jax: 0.10.0
libtpu: 0.0.40
codegen_flags: <defaults>
</compile_context>

<pallas_src>
import functools
import math

import jax
import jax.numpy as jnp
from jax import lax
from jax.experimental import pallas as pl
from jax.experimental.pallas import tpu as pltpu

_BN_EPS = 1e-5


# ----------------------------- Pallas kernel ------------------------------ #

def _conv_bn_lrelu_kernel(x_ref, halo_ref, w_ref, b_ref, o_ref, *,
                          K, pad_l, slope):
    # x_ref   : (1, Cin, TL)        activation tile (bf16 or f32)
    # halo_ref: (1, 1, Cin, K-1)    left(pad_l)/right(pad_r) neighbour columns
    # w_ref   : (Cout, K*Cin) bf16  BN-folded conv weight, tap-major rows
    # b_ref   : (Cout, 1)     f32   BN-folded bias
    # o_ref   : (1, Cout, TL) f32   output tile
    TL = x_ref.shape[2]
    pad_r = (K - 1) - pad_l

    x = x_ref[0].astype(jnp.bfloat16)
    halo = halo_ref[0, 0].astype(jnp.bfloat16)

    # Extended window: original columns [tile_start - pad_l, tile_start+TL+pad_r)
    pieces = []
    if pad_l > 0:
        pieces.append(halo[:, :pad_l])
    pieces.append(x)
    if pad_r > 0:
        pieces.append(halo[:, pad_l:])
    xe = jnp.concatenate(pieces, axis=1) if len(pieces) > 1 else x  # (Cin, TL+K-1)

    # im2col slab (K*Cin, TL), tap-major: whole conv = one MXU contraction.
    slab = jnp.concatenate([xe[:, k:k + TL] for k in range(K)], axis=0)
    acc = jnp.dot(w_ref[...], slab, preferred_element_type=jnp.float32)

    acc = acc + b_ref[...]                           # folded BN bias, f32
    if slope != 1.0:
        acc = jnp.where(acc >= 0, acc, slope * acc)  # LeakyReLU, f32
    o_ref[0] = acc.astype(o_ref.dtype)


# ------------------------------- wrapper ----------------------------------- #

def upsampling_layer(x, w2, b, *, kernel_size, slope=0.2, tile_l=512):
    """Conv1d(stride=1, padding='same') + folded BatchNorm1d + LeakyReLU.

    x  : (B, Cin, L)  bf16 (preferred) or f32 activations.
    w2 : (Cout, K*Cin) bf16 BN-folded weight, tap-major rows (prepare_params).
    b  : (Cout,) f32 BN-folded bias.
    """
    K = kernel_size
    B, Cin, L = x.shape
    Cout = w2.shape[0]
    assert w2.shape[1] == K * Cin
    assert K >= 2, "kernel_size==1 path not needed by UpSamplingLayer (K=9)"
    assert tile_l % 128 == 0
    pad_l = (K - 1) // 2
    pad_r = (K - 1) - pad_l

    # Pad L up to a tile multiple (right zeros match 'same' zero padding; the
    # extra output columns are sliced off at the end).
    n_t = (L + tile_l - 1) // tile_l
    Lp = n_t * tile_l
    if Lp != L:
        x = jnp.pad(x, ((0, 0), (0, 0), (0, Lp - L)))

    # Tiny per-tile halo side-array (B, n_t, Cin, K-1): the pad_l columns to
    # the left of each tile and pad_r columns to the right (zeros at edges).
    xr = x.reshape(B, Cin, n_t, tile_l)
    left = jnp.concatenate(
        [jnp.zeros((B, Cin, 1, pad_l), x.dtype),
         xr[:, :, :-1, tile_l - pad_l:]], axis=2)
    right = jnp.concatenate(
        [xr[:, :, 1:, :pad_r],
         jnp.zeros((B, Cin, 1, pad_r), x.dtype)], axis=2)
    halo = jnp.transpose(jnp.concatenate([left, right], axis=3), (0, 2, 1, 3))

    b2 = b.reshape(Cout, 1).astype(jnp.float32)

    kern = functools.partial(_conv_bn_lrelu_kernel, K=K, pad_l=pad_l,
                             slope=float(slope))
    out = pl.pallas_call(
        kern,
        out_shape=jax.ShapeDtypeStruct((B, Cout, Lp), jnp.float32),
        grid=(B, n_t),
        in_specs=[
            pl.BlockSpec((1, Cin, tile_l), lambda bi, ti: (bi, 0, ti)),
            pl.BlockSpec((1, 1, Cin, K - 1), lambda bi, ti: (bi, ti, 0, 0)),
            pl.BlockSpec((Cout, K * Cin), lambda bi, ti: (0, 0)),
            pl.BlockSpec((Cout, 1), lambda bi, ti: (0, 0)),
        ],
        out_specs=pl.BlockSpec((1, Cout, tile_l), lambda bi, ti: (bi, 0, ti)),
        compiler_params=pltpu.CompilerParams(
            dimension_semantics=("parallel", "parallel")),
    )(x, halo, w2, b2)

    if Lp != L:
        out = out[:, :, :L]
    return out


# --------------------------- parameters ------------------------------------ #

def init_upsampling_layer_params(key, channel_in, channel_out, kernel_size=9):
    """Random Conv1d + BatchNorm1d parameters (PyTorch layout, eval mode)."""
    k1, k2, k3, k4, k5, k6 = jax.random.split(key, 6)
    fan = channel_in * kernel_size
    return dict(
        w=jax.random.normal(k1, (channel_out, channel_in, kernel_size),
                            jnp.float32) / math.sqrt(fan),
        b=0.05 * jax.random.normal(k2, (channel_out,), jnp.float32),
        gamma=1.0 + 0.1 * jax.random.normal(k3, (channel_out,), jnp.float32),
        beta=0.1 * jax.random.normal(k4, (channel_out,), jnp.float32),
        running_mean=0.1 * jax.random.normal(k5, (channel_out,), jnp.float32),
        running_var=1.0 + 0.1 * jax.random.uniform(k6, (channel_out,),
                                                   jnp.float32),
    )


def prepare_params(p, eps=_BN_EPS):
    """Fold eval-mode BN into the conv and lay the weight out for the kernel.

    Done once, outside the jitted forward. Returns
      w2: (Cout, K*Cin) bf16, rows ordered tap-major (row = k*Cin + cin),
      b2: (Cout,) f32 folded bias.
    """
    scale = p["gamma"] / jnp.sqrt(p["running_var"] + eps)
    w_f = p["w"] * scale[:, None, None]                     # (Cout, Cin, K)
    b_f = (p["b"] - p["running_mean"]) * scale + p["beta"]
    cout, cin, k = p["w"].shape
    w2 = jnp.transpose(w_f, (0, 2, 1)).reshape(cout, k * cin)
    return w2.astype(jnp.bfloat16), b_f.astype(jnp.float32)


# ----------------------------- reference ----------------------------------- #

def upsampling_layer_reference(x, w2, b, *, kernel_size, slope=0.2):
    """Pure-XLA reference using the same bf16-rounded weights/activations."""
    cout, kcin = w2.shape
    cin = x.shape[1]
    k = kernel_size
    w = jnp.transpose(w2.astype(jnp.float32).reshape(cout, k, cin), (0, 2, 1))
    pad_l = (k - 1) // 2
    pad_r = (k - 1) - pad_l
    y = lax.conv_general_dilated(
        x.astype(jnp.float32), w, window_strides=(1,),
        padding=[(pad_l, pad_r)],
        dimension_numbers=("NCH", "OIH", "NCH"),
        precision=lax.Precision.HIGHEST)
    y = y + b[None, :, None]
    return jnp.where(y >= 0, y, slope * y)


# -------------------------------- main -------------------------------------- #

if __name__ == "__main__":
    B, CIN, COUT, K, L = 2, 32, 16, 9, 2048      # UpSamplingLayer(32, 16)
    TILE_L = 512

    key = jax.random.PRNGKey(0)
    pkey, xkey = jax.random.split(key)
    params = init_upsampling_layer_params(pkey, CIN, COUT, K)
    w2, b2 = prepare_params(params)              # folded + reshaped + bf16 once

    x = jax.random.normal(xkey, (B, CIN, L), jnp.float32)
    x_bf16 = x.astype(jnp.bfloat16)              # bf16 activations into kernel

    fwd = jax.jit(functools.partial(upsampling_layer, kernel_size=K,
                                    slope=0.2, tile_l=TILE_L))
    out = jax.block_until_ready(fwd(x_bf16, w2, b2))

    ref = upsampling_layer_reference(x_bf16, w2, b2, kernel_size=K, slope=0.2)

    assert out.shape == (B, COUT, L), out.shape
    assert out.dtype == jnp.float32
    assert bool(jnp.all(jnp.isfinite(out)))
    assert bool(jnp.allclose(out, ref, atol=2e-3, rtol=2e-3)), float(
        jnp.max(jnp.abs(out - ref)))
    print("KERNEL_OK")
</pallas_src>

<mosaic_0001>
module attributes {stable_mosaic.version = 11 : i64} {
  func.func @_conv_bn_lrelu_kernel(%arg0: i32, %arg1: i32, %arg2: memref<1x32x512xbf16, #tpu.memory_space<vmem>>, %arg3: memref<1x1x32x8xbf16, #tpu.memory_space<vmem>>, %arg4: memref<16x288xbf16, #tpu.memory_space<vmem>>, %arg5: memref<16x1xf32, #tpu.memory_space<vmem>>, %arg6: memref<1x16x512xf32, #tpu.memory_space<vmem>>) attributes {dimension_semantics = [#tpu.dimension_semantics<parallel>, #tpu.dimension_semantics<parallel>], iteration_bounds = array<i64: 2, 4>, scalar_prefetch = 0 : i64, scratch_operands = 0 : i64, tpu.core_type = #tpu.core_type<tc>, window_params = [{transform_indices = @transform_0, window_bounds = array<i64: 1, 32, 512>}, {transform_indices = @transform_1, window_bounds = array<i64: 1, 1, 32, 8>}, {pipeline_mode = #tpu.pipeline_mode<synchronous>, transform_indices = @transform_2, window_bounds = array<i64: 16, 288>}, {pipeline_mode = #tpu.pipeline_mode<synchronous>, transform_indices = @transform_3, window_bounds = array<i64: 16, 1>}, {transform_indices = @transform_4, window_bounds = array<i64: 1, 16, 512>}]} {
    %c0 = arith.constant 0 : index
    %c0_0 = arith.constant 0 : index
    %c0_1 = arith.constant 0 : index
    %0 = vector.load %arg2[%c0, %c0_0, %c0_1] : memref<1x32x512xbf16, #tpu.memory_space<vmem>>, vector<1x32x512xbf16>
    %1 = vector.shape_cast %0 : vector<1x32x512xbf16> to vector<32x512xbf16>
    %c0_2 = arith.constant 0 : index
    %c0_3 = arith.constant 0 : index
    %c0_4 = arith.constant 0 : index
    %c0_5 = arith.constant 0 : index
    %2 = vector.load %arg3[%c0_2, %c0_3, %c0_4, %c0_5] : memref<1x1x32x8xbf16, #tpu.memory_space<vmem>>, vector<1x1x32x8xbf16>
    %3 = vector.shape_cast %2 : vector<1x1x32x8xbf16> to vector<32x8xbf16>
    %4 = vector.extract_strided_slice %3 {offsets = [0, 0], sizes = [32, 4], strides = [1, 1]} : vector<32x8xbf16> to vector<32x4xbf16>
    %5 = vector.extract_strided_slice %3 {offsets = [0, 4], sizes = [32, 4], strides = [1, 1]} : vector<32x8xbf16> to vector<32x4xbf16>
    %6 = tpu.concatenate %4, %1, %5 in 1 : vector<32x4xbf16>, vector<32x512xbf16>, vector<32x4xbf16> -> vector<32x520xbf16>
    %7 = vector.extract_strided_slice %6 {offsets = [0, 0], sizes = [32, 512], strides = [1, 1]} : vector<32x520xbf16> to vector<32x512xbf16>
    %8 = vector.extract_strided_slice %6 {offsets = [0, 1], sizes = [32, 512], strides = [1, 1]} : vector<32x520xbf16> to vector<32x512xbf16>
    %9 = vector.extract_strided_slice %6 {offsets = [0, 2], sizes = [32, 512], strides = [1, 1]} : vector<32x520xbf16> to vector<32x512xbf16>
    %10 = vector.extract_strided_slice %6 {offsets = [0, 3], sizes = [32, 512], strides = [1, 1]} : vector<32x520xbf16> to vector<32x512xbf16>
    %11 = vector.extract_strided_slice %6 {offsets = [0, 4], sizes = [32, 512], strides = [1, 1]} : vector<32x520xbf16> to vector<32x512xbf16>
    %12 = vector.extract_strided_slice %6 {offsets = [0, 5], sizes = [32, 512], strides = [1, 1]} : vector<32x520xbf16> to vector<32x512xbf16>
    %13 = vector.extract_strided_slice %6 {offsets = [0, 6], sizes = [32, 512], strides = [1, 1]} : vector<32x520xbf16> to vector<32x512xbf16>
    %14 = vector.extract_strided_slice %6 {offsets = [0, 7], sizes = [32, 512], strides = [1, 1]} : vector<32x520xbf16> to vector<32x512xbf16>
    %15 = vector.extract_strided_slice %6 {offsets = [0, 8], sizes = [32, 512], strides = [1, 1]} : vector<32x520xbf16> to vector<32x512xbf16>
    %16 = tpu.concatenate %7, %8, %9, %10, %11, %12, %13, %14, %15 in 0 : vector<32x512xbf16>, vector<32x512xbf16>, vector<32x512xbf16>, vector<32x512xbf16>, vector<32x512xbf16>, vector<32x512xbf16>, vector<32x512xbf16>, vector<32x512xbf16>, vector<32x512xbf16> -> vector<288x512xbf16>
    %c0_6 = arith.constant 0 : index
    %c0_7 = arith.constant 0 : index
    %17 = vector.load %arg4[%c0_6, %c0_7] : memref<16x288xbf16, #tpu.memory_space<vmem>>, vector<16x288xbf16>
    %cst = arith.constant dense<0.000000e+00> : vector<16x512xf32>
    %18 = tpu.matmul %17, %16, %cst {dimension_numbers = #tpu.dot_dimension_numbers<[1], [0], [0], [1], [0, 0, 1, 1], [], []>} : vector<16x288xbf16>, vector<288x512xbf16>, vector<16x512xf32> -> vector<16x512xf32>
    %c0_8 = arith.constant 0 : index
    %c0_9 = arith.constant 0 : index
    %19 = vector.load %arg5[%c0_8, %c0_9] : memref<16x1xf32, #tpu.memory_space<vmem>>, vector<16x1xf32>
    %20 = vector.broadcast %19 : vector<16x1xf32> to vector<16x512xf32>
    %21 = arith.addf %18, %20 : vector<16x512xf32>
    %cst_10 = arith.constant 0.000000e+00 : f32
    %22 = vector.broadcast %cst_10 : f32 to vector<16x512xf32>
    %23 = arith.cmpf oge, %21, %22 : vector<16x512xf32>
    %cst_11 = arith.constant 2.000000e-01 : f32
    %24 = vector.broadcast %cst_11 : f32 to vector<16x512xf32>
    %25 = arith.mulf %24, %21 : vector<16x512xf32>
    %26 = arith.select %23, %21, %25 : vector<16x512xi1>, vector<16x512xf32>
    %c0_12 = arith.constant 0 : index
    %c0_13 = arith.constant 0 : index
    %c0_14 = arith.constant 0 : index
    %27 = vector.load %arg6[%c0_12, %c0_13, %c0_14] : memref<1x16x512xf32, #tpu.memory_space<vmem>>, vector<1x16x512xf32>
    %28 = vector.shape_cast %27 : vector<1x16x512xf32> to vector<16x512xf32>
    %29 = vector.shape_cast %26 : vector<16x512xf32> to vector<1x16x512xf32>
    tpu.vector_store %arg6[%c0_12, %c0_13, %c0_14], %29 {strides = array<i32>} : memref<1x16x512xf32, #tpu.memory_space<vmem>>, vector<1x16x512xf32>,
    return
  }
  func.func @transform_0(%arg0: i32, %arg1: i32) -> (i32, i32, i32) {
    %c0_i32 = arith.constant 0 : i32
    %c0_i32_0 = arith.constant 0 : i32
    return %arg0, %c0_i32, %arg1 : i32, i32, i32
  }
  func.func @transform_1(%arg0: i32, %arg1: i32) -> (i32, i32, i32, i32) {
    %c0_i32 = arith.constant 0 : i32
    %c0_i32_0 = arith.constant 0 : i32
    %c0_i32_1 = arith.constant 0 : i32
    return %arg0, %arg1, %c0_i32, %c0_i32_0 : i32, i32, i32, i32
  }
  func.func @transform_2(%arg0: i32, %arg1: i32) -> (i32, i32) {
    %c0_i32 = arith.constant 0 : i32
    %c0_i32_0 = arith.constant 0 : i32
    %c0_i32_1 = arith.constant 0 : i32
    return %c0_i32, %c0_i32_0 : i32, i32
  }
  func.func @transform_3(%arg0: i32, %arg1: i32) -> (i32, i32) {
    %c0_i32 = arith.constant 0 : i32
    %c0_i32_0 = arith.constant 0 : i32
    %c0_i32_1 = arith.constant 0 : i32
    return %c0_i32, %c0_i32_0 : i32, i32
  }
  func.func @transform_4(%arg0: i32, %arg1: i32) -> (i32, i32, i32) {
    %c0_i32 = arith.constant 0 : i32
    %c0_i32_0 = arith.constant 0 : i32
    return %arg0, %c0_i32, %arg1 : i32, i32, i32
  }
}

</mosaic_0001>

<bundles_post_ra>
// kernel: upsampling_layer.1
= control target key start
LH: loop header
LB: loop body
LE: loop exit
PB: predicated region body
PF: predicated region fallthrough
CT: control target
= control target key end

     0   :  { %9 = vsyncpa [#allocation4], 0  ;;  %s1719_s0 = inlined_call_operand.vmem [shape: bf16[2,32,2048], index: 0, kind: input, shape index: {}]   ;;  %s1720_s1 = inlined_call_operand.vmem [shape: bf16[2,4,32,8], index: 1, kind: input, shape index: {}]   ;;  %s1721_s2 = inlined_call_operand.vmem [shape: bf16[16,288], index: 2, kind: input, shape index: {}]   ;;  %s1722_s3 = inlined_call_operand.vmem [shape: f32[16,1], index: 3, kind: input, shape index: {}]   ;;  %s1723_s4 = inlined_call_operand.hbm [shape: f32[2,16,2048], index: 4, kind: output, shape index: {}]  }
   0x1   :  { %11 = vsyncpa [#allocation4 + $0x1], 0  ;;  %s1332_s15 = smov 0   ;;  %s1334_s16 = smov 0  }
   0x2   :  { %s1336_s17 = smov 0   ;;  %s1338_s18 = smov 0  }
   0x3   :  { %s1340_s19 = smov 0   ;;  %s1342_s20 = smov 0  }
   0x4   :  { %s1344_s21 = smov 0   ;;  %s1346_s22 = smov 0  }
   0x5 LB: > { %s1042_s23 = sadd.s32 4294967295, %s1291_s22   ;;  %s1043_s24 = sadd.s32 4294967294, %s1291_s22   ;;  %s1291_s22 = sphi %s1346_s22, %s17_s22   ;;  %s1287_s21 = sphi %s1344_s21, %s1733_s21   ;;  %s1283_s20 = sphi %s1342_s20, %s1732_s20   ;;  %s1279_s19 = sphi %s1340_s19, %s1731_s19   ;;  %s1275_s18 = sphi %s1338_s18, %s1730_s18   ;;  %s1271_s17 = sphi %s1336_s17, %s1729_s17   ;;  %s1267_s16 = sphi %s1334_s16, %s1728_s16   ;;  %s1263_s15 = sphi %s1332_s15, %s1727_s15  }
   0x6   : > { %s26_s25 = sadd.s32 1, %s1283_s20  ;;  %s29_s26 = sadd.s32 1, %s1287_s21 }
   0x7   : > { %p27_p0 = scmp.ge.s32.totalorder %s26_s25, 4  ;;  %p45_p1 = scmp.ne.s32.totalorder %s1271_s17, %s1267_s16 }
   0x8   : > { %p46_p2 = scmp.eq.s32.totalorder %s1291_s22, 0  ;;  %p147_p5 = scmp.eq.s32.totalorder %s1042_s23, 7 }
   0x9   : > { %s1735_s25 = smov (%p27_p0, %s26_s25), 0  ;;  %s1737_s26 = smov (!%p27_p0, %s29_s26), %s1287_s21 }
   0xa   : > { %s34_s27 = ssub.s32 %s1283_s20, %s1735_s25  ;;  %p1384_p3 = por %p46_p2, %p45_p1 }
   0xb   : > { %p31_p4 = scmp.ge.s32.totalorder %s1737_s26, 2  ;;  %p152_p6 = scmp.ne.s32.totalorder %s1267_s16, %s1263_s15 }
   0xc   : > { %p153_p7 = scmp.eq.s32.totalorder %s1043_s24, 7  ;;  %p1392_p8 = por %p147_p5, %p45_p1 }
   0xd   : > { %s1739_s26 = smov (%p31_p4, %s1737_s26), 0  ;;  %s38_s7 = sadd.s32 1, %s1271_s17 }
   0xe   : > { %p1396_p9 = por %p153_p7, %p152_p6  ;;  %s33_s5 = ssub.s32 %s1287_s21, %s1739_s26 }
   0xf   : > { %s35_s6 = sor.u32 %s34_s27, %s33_s5  ;;  %p1045_p11 = scmp.ge.s32.totalorder %s1291_s22, 8 }
  0x10   : > { %p36_p10 = scmp.eq.s32.totalorder %s35_s6, 0 }
  0x11   : > { %175 = sbr.rel (%p1045_p11) target bundleno = 35 (0x23), region = 24 }
  0x12   : > { %s1404_s8 = scalar_select %p36_p10, %s1271_s17, %s38_s7  }
  0x18   : > { %178 = sbr.rel (!%p1384_p3) target bundleno = 35 (0x23), region = 28  ;;  %s180_s9 = sand.u32 (%p1384_p3), 1, %s1271_s17  }
  0x19   : > { %s1047_s10 = sshll.u32 (%p1384_p3), %s1283_s20, 2  ;;  %s1046_s11 = sshll.u32 (%p1384_p3), %s180_s9, 6 }
  0x1a   : > { %s1048_s12 = sshll.u32 (%p1384_p3), %s1287_s21, 6  ;;  %s182_s5 = scalar_lea.vmem (%p1384_p3), [#allocation2], %s1046_s11 }
  0x1b   : > { %s185_s13 = sadd.s32 (%p1384_p3), %s1048_s12, %s1047_s10 }
  0x1c   : > { %s1049_s14 = sshll.u32 (%p1384_p3), %s185_s13, 2 }
  0x1d   : > { %s187_s27 = scalar_lea.vmem (%p1384_p3), %s1719_s0, %s1049_s14 }
  0x1e   : > { %v200_v0 = vld [vmem:[%s187_s27] sm:$0xff] (%p1384_p3)  ;;  %v202_v1 = vld [vmem:[%s187_s27 + $0x8] sm:$0xff] (%p1384_p3) }
  0x1f   : > { %v204_v2 = vld [vmem:[%s187_s27 + $0x40] sm:$0xff]  ;;  %201 = vst [vmem:[%s182_s5] sm:$0xff] %v200_v0  ;;  %203 = vst [vmem:[%s182_s5 + $0x8] sm:$0xff] %v202_v1  ;;  %v206_v3 = vld [vmem:[%s187_s27 + $0x48] sm:$0xff] }
  0x20   : > { %205 = vst [vmem:[%s182_s5 + $0x10] sm:$0xff] %v204_v2  ;;  %v208_v4 = vld [vmem:[%s187_s27 + $0x80] sm:$0xff]  ;;  %v210_v5 = vld [vmem:[%s187_s27 + $0x88] sm:$0xff]  ;;  %207 = vst [vmem:[%s182_s5 + $0x18] sm:$0xff] %v206_v3 }
  0x21   : > { %209 = vst [vmem:[%s182_s5 + $0x20] sm:$0xff] %v208_v4  ;;  %211 = vst [vmem:[%s182_s5 + $0x28] sm:$0xff] %v210_v5  ;;  %v212_v6 = vld [vmem:[%s187_s27 + $0xc0] sm:$0xff]  ;;  %v214_v7 = vld [vmem:[%s187_s27 + $0xc8] sm:$0xff] }
  0x22   : > { %213 = vst [vmem:[%s182_s5 + $0x30] sm:$0xff] %v212_v6  ;;  %215 = vst [vmem:[%s182_s5 + $0x38] sm:$0xff] %v214_v7 }
  0x23 PF: > { %p1050_p12 = scmp.ge.s32.totalorder %s1291_s22, 1  ;;  %p232_p13 = scmp.lt.s32.totalorder %s1291_s22, 9 }
  0x25   : > { %p233_p0 = pnand %p1050_p12, %p232_p13 }
  0x26   : > { %s239_s28 = sand.u32 (!%p233_p0), 1, %s1267_s16   ;;  %p274_p1 = scmp.lt.s32.totalorder (!%p233_p0), %s1279_s19, 1  ;;  %vm355_vm0 = vcmask (!%p233_p0), 31744   ;;  %vm405_vm1 = vcmask (!%p233_p0), 1039360   ;;  %v1195_v53 = vld [vmem:[%s1721_s2 + $0x4] ss:$12 sps:$4 sm:$0xff] (!%p233_p0)  }
  0x27   : > { %236 = sbr.rel (%p233_p0) target bundleno = 678 (0x2a6), region = 55  ;;  %s1420_s6 = sshll.u32 (!%p233_p0), %s239_s28, 6  ;;  %vm442_vm2 = vcmask (!%p233_p0), 1031168   ;;  %834 = vmatprep.mubr.bf16.mxu1 (!%p233_p0), %v1195_v53  ;;  %748 = vmatprep.mubr.bf16.mxu0 (!%p233_p0), %v1195_v53  ;;  %v1302_v3 = vmov (!%p233_p0), 0   ;;  %vm479_vm3 = vcmask (!%p233_p0), 1022976   ;;  %vm516_vm4 = vcmask (!%p233_p0), 1014784  }
  0x28   : > { %s241_s7 = scalar_lea.vmem (!%p233_p0), [#allocation2], %s1420_s6  ;;  %p276_p2 = scmp.lt.s32.totalorder (!%p233_p0), %s1275_s18, 3  ;;  %1177 = vset.pattern.permute.xlu0 (!%p233_p0), %v1302_v3  ;;  %1178 = vset.pattern.permute.xlu1 (!%p233_p0), %v1302_v3  ;;  %vm553_vm5 = vcmask (!%p233_p0), 1006592   ;;  %vm590_vm6 = vcmask (!%p233_p0), 998400   ;;  %vm627_vm7 = vcmask (!%p233_p0), 990208   ;;  %vm664_vm8 = vcmask (!%p233_p0), 982016  }
  0x29   : > { %v1179_v8 = vld [vmem:[%s241_s7 + $0x8] ss:$16 sps:$4 sm:$0xff] (!%p233_p0)   ;;  %v1181_v9 = vld [vmem:[%s241_s7 + $0xc] ss:$16 sps:$4 sm:$0xff] (!%p233_p0)   ;;  %s1293_s9 = smov (!%p233_p0), 4   ;;  %s1301_s27 = smov (!%p233_p0), 120  }
  0x2a   : > { %343 = vrot.lane.b32.xlu1 (!%p233_p0), %v1179_v8, %s1293_s9  ;;  %v1182_v10 = vld [vmem:[%s241_s7] ss:$16 sps:$4 sm:$0xff] (!%p233_p0)   ;;  %v1184_v11 = vld [vmem:[%s241_s7 + $0x4] ss:$16 sps:$4 sm:$0xff] (!%p233_p0)   ;;  %v1188_v14 = vld [vmem:[%s241_s7 + $0x2c] ss:$16 sps:$4 sm:$0xff] (!%p233_p0)  }
  0x2b   : > { %339 = vrot.lane.b32.xlu0 (!%p233_p0), %v1182_v10, %s1293_s9  ;;  %v1185_v12 = vld [vmem:[%s241_s7 + $0x24] ss:$16 sps:$4 sm:$0xff] (!%p233_p0)   ;;  %v1187_v13 = vld [vmem:[%s241_s7 + $0x20] ss:$16 sps:$4 sm:$0xff] (!%p233_p0)   ;;  %v1190_v15 = vld [vmem:[%s241_s7 + $0x28] ss:$16 sps:$4 sm:$0xff] (!%p233_p0)  }
  0x2c   : > { %s1294_s7 = smov (!%p233_p0), 127   ;;  %vm712_vm9 = vcmask (!%p233_p0), 261120   ;;  %s1073_s24 = sshll.u32 (!%p233_p0), %s1279_s19, 5 }
  0x2e   : > { %s275_s10 = scalar_select %p274_p1, %s1279_s19, 1  ;;  %345 = vrot.lane.b32.xlu1 %v1181_v9, %s1293_s9 }
  0x2f   : > { %s277_s11 = scalar_select %p276_p2, %s1275_s18, 3  ;;  %341 = vrot.lane.b32.xlu0 %v1184_v11, %s1293_s9 }
  0x30   : > { %s1054_s12 = sshll.u32 %s275_s10, 4  ;;  %s1296_s10 = smov 125  }
  0x31   : > { %s1053_s13 = sshll.u32 %s277_s11, 2  ;;  %s1297_s11 = smov 124  }
  0x32   : > { %s280_s14 = sadd.s32 %s1054_s12, %s1053_s13  ;;  %349 = vrot.lane.b32.xlu1 %v1185_v12, %s1293_s9  ;;  %s1298_s12 = smov 123  }
  0x33   : > { %s1055_s23 = sshll.u32 %s280_s14, 2  ;;  %347 = vrot.lane.b32.xlu0 %v1187_v13, %s1293_s9  ;;  %s1299_s13 = smov 122   ;;  %v685_v13 = vld [vmem:[%s1722_s3] sm:$0xff] }
  0x34   : > { %s282_s5 = scalar_lea.vmem %s1720_s1, %s1055_s23  ;;  %s1300_s14 = smov 121  }
  0x35   : > { %v1191_v19 = vld [vmem:[%s282_s5] sm:$0xff]   ;;  %v1192_v24 = vld [vmem:[%s282_s5 + $0x8] sm:$0xff]   ;;  %s1072_s23 = sshll.u32 %s1275_s18, 2  ;;  %s272_s18 = scalar_lea.vmem [#allocation3], %s1420_s6 }
  0x36   : > { %353 = vrot.lane.b32.xlu1 %v1188_v14, %s1293_s9  ;;  %s936_s19 = sshll.u32 %s272_s18, 4  ;;  %s1658_s19 = int_to_ptr.vmem [resolvable:$true] %s936_s19 }
  0x37   : > { %351 = vrot.lane.b32.xlu0 %v1190_v15, %s1293_s9  ;;  %s1295_s9 = smov 126  }
  0x9c   : > { %v344_v16 = vpop.permute.xlu1 %343 }
  0x9d   : > { %v340_v17 = vpop.permute.xlu0 %339 }
  0x9e   : > { %v1443_v26 = vsel %vm355_vm0, %v1191_v19, %v340_v17 }
  0xa0   : > { %v346_v18 = vpop.permute.xlu1 %345 }
  0xa1   : > { %v1431_v20 = vsel %vm355_vm0, %v344_v16, %v346_v18  ;;  %v342_v21 = vpop.permute.xlu0 %341  ;;  %v1446_v27 = vsel %vm355_vm0, %v346_v18, %v1191_v19 }
  0xa2   : > { %802 = vmatprep.subr.bf16.mxu1 %v1431_v20  ;;  %v1435_v22 = vsel %vm355_vm0, %v340_v17, %v342_v21  ;;  %v1438_v23 = vsel %vm355_vm0, %v342_v21, %v344_v16  ;;  %v686_v16 = vld [vmem:[%s1722_s3 + $0x8] sm:$0xff] }
  0xa3   : > { %389 = vrot.lane.b32.xlu1 %v1438_v23, %s1294_s7  ;;  %387 = vrot.lane.b32.xlu0 %v1435_v22, %s1294_s7 }
  0xa4   : > { %v350_v25 = vpop.permute.xlu1 %349  ;;  %716 = vmatprep.subr.bf16.mxu0 %v1435_v22  ;;  %803 = vmatpush1.bf16.msra.mxu1 %v1438_v23 }
  0xa5   : > { %717 = vmatpush1.bf16.msra.mxu0 %v1443_v26  ;;  %v348_v28 = vpop.permute.xlu0 %347 }
  0xa6   : > { %v1452_v29 = vsel %vm355_vm0, %v348_v28, %v350_v25  ;;  %v1455_v30 = vsel %vm355_vm0, %v1192_v24, %v348_v28 }
  0xa7   : > { %393 = vrot.lane.b32.xlu1 %v1446_v27, %s1294_s7  ;;  %391 = vrot.lane.b32.xlu0 %v1431_v20, %s1294_s7 }
  0xa8   : > { %v354_v31 = vpop.permute.xlu1 %353  ;;  %718 = vmatprep.subr.bf16.mxu0 %v1452_v29 }
  0xa9   : > { %v352_v32 = vpop.permute.xlu0 %351  ;;  %719 = vmatpush1.bf16.msra.mxu0 %v1455_v30  ;;  %v1474_v35 = vsel %vm355_vm0, %v354_v31, %v1192_v24 }
  0xaa   : > { %v1462_v33 = vsel %vm355_vm0, %v350_v25, %v352_v32  ;;  %v1465_v34 = vsel %vm355_vm0, %v352_v32, %v354_v31 }
  0xab   : > { %385 = vrot.lane.b32.xlu0 %v1443_v26, %s1294_s7  ;;  %397 = vrot.lane.b32.xlu1 %v1452_v29, %s1294_s7 }
  0xac   : > { %804 = vmatprep.subr.bf16.mxu1 %v1465_v34 }
  0xad   : > { %805 = vmatpush1.bf16.msra.mxu1 %v1462_v33 }
  0xaf   : > { %401 = vrot.lane.b32.xlu1 %v1465_v34, %s1294_s7  ;;  %399 = vrot.lane.b32.xlu0 %v1462_v33, %s1294_s7 }
  0xb3   : > { %395 = vrot.lane.b32.xlu1 %v1455_v30, %s1294_s7  ;;  %403 = vrot.lane.b32.xlu0 %v1474_v35, %s1294_s7 }
  0xb7   : > { %426 = vrot.lane.b32.xlu1 %v1438_v23, %s1295_s9  ;;  %424 = vrot.lane.b32.xlu0 %v1435_v22, %s1295_s9 }
  0xbb   : > { %430 = vrot.lane.b32.xlu1 %v1446_v27, %s1295_s9  ;;  %428 = vrot.lane.b32.xlu0 %v1431_v20, %s1295_s9 }
  0xbf   : > { %434 = vrot.lane.b32.xlu1 %v1452_v29, %s1295_s9  ;;  %422 = vrot.lane.b32.xlu0 %v1443_v26, %s1295_s9 }
  0xc3   : > { %438 = vrot.lane.b32.xlu1 %v1465_v34, %s1295_s9  ;;  %436 = vrot.lane.b32.xlu0 %v1462_v33, %s1295_s9 }
  0xc7   : > { %432 = vrot.lane.b32.xlu1 %v1455_v30, %s1295_s9  ;;  %440 = vrot.lane.b32.xlu0 %v1474_v35, %s1295_s9 }
  0xcb   : > { %463 = vrot.lane.b32.xlu1 %v1438_v23, %s1296_s10  ;;  %461 = vrot.lane.b32.xlu0 %v1435_v22, %s1296_s10 }
  0xcf   : > { %467 = vrot.lane.b32.xlu1 %v1446_v27, %s1296_s10  ;;  %465 = vrot.lane.b32.xlu0 %v1431_v20, %s1296_s10 }
  0xd3   : > { %471 = vrot.lane.b32.xlu1 %v1452_v29, %s1296_s10  ;;  %459 = vrot.lane.b32.xlu0 %v1443_v26, %s1296_s10 }
  0xd7   : > { %475 = vrot.lane.b32.xlu1 %v1465_v34, %s1296_s10  ;;  %473 = vrot.lane.b32.xlu0 %v1462_v33, %s1296_s10 }
  0xdb   : > { %469 = vrot.lane.b32.xlu1 %v1455_v30, %s1296_s10  ;;  %477 = vrot.lane.b32.xlu0 %v1474_v35, %s1296_s10  ;;  %s1667_s10 = scalar_lea.sflag [#allocation4], %s239_s28 }
  0xdf   : > { %500 = vrot.lane.b32.xlu1 %v1438_v23, %s1297_s11  ;;  %498 = vrot.lane.b32.xlu0 %v1435_v22, %s1297_s11 }
  0xe3   : > { %504 = vrot.lane.b32.xlu1 %v1446_v27, %s1297_s11  ;;  %502 = vrot.lane.b32.xlu0 %v1431_v20, %s1297_s11 }
  0xe7   : > { %508 = vrot.lane.b32.xlu1 %v1452_v29, %s1297_s11  ;;  %496 = vrot.lane.b32.xlu0 %v1443_v26, %s1297_s11 }
  0xeb   : > { %512 = vrot.lane.b32.xlu1 %v1465_v34, %s1297_s11  ;;  %510 = vrot.lane.b32.xlu0 %v1462_v33, %s1297_s11 }
  0xef   : > { %506 = vrot.lane.b32.xlu1 %v1455_v30, %s1297_s11  ;;  %514 = vrot.lane.b32.xlu0 %v1474_v35, %s1297_s11  ;;  %s1197_s11 = scalar_lea.vmem %s1658_s19, 1024 }
  0xf0   : > { %p1198_p3 = scmp.ne.s32.totalorder %s1658_s19, %s1197_s11 }
  0xf2   : > { %p1199_p4 = pnand %p1198_p3, %p1392_p8 }
  0xf3   : > { %537 = vrot.lane.b32.xlu1 %v1438_v23, %s1298_s12  ;;  %535 = vrot.lane.b32.xlu0 %v1435_v22, %s1298_s12 }
  0xf4   : > { %p1200_p5 = pneg %p1199_p4 }
  0xf7   : > { %541 = vrot.lane.b32.xlu1 %v1446_v27, %s1298_s12  ;;  %539 = vrot.lane.b32.xlu0 %v1431_v20, %s1298_s12 }
  0xfb   : > { %545 = vrot.lane.b32.xlu1 %v1452_v29, %s1298_s12  ;;  %533 = vrot.lane.b32.xlu0 %v1443_v26, %s1298_s12 }
  0xff   : > { %549 = vrot.lane.b32.xlu1 %v1465_v34, %s1298_s12  ;;  %547 = vrot.lane.b32.xlu0 %v1462_v33, %s1298_s12 }
 0x103   : > { %543 = vrot.lane.b32.xlu1 %v1455_v30, %s1298_s12  ;;  %551 = vrot.lane.b32.xlu0 %v1474_v35, %s1298_s12  ;;  %s1303_s12 = smov [#allocation3]  }
 0x107   : > { %574 = vrot.lane.b32.xlu1 %v1438_v23, %s1299_s13  ;;  %572 = vrot.lane.b32.xlu0 %v1435_v22, %s1299_s13 }
 0x10b   : > { %578 = vrot.lane.b32.xlu1 %v1446_v27, %s1299_s13  ;;  %576 = vrot.lane.b32.xlu0 %v1431_v20, %s1299_s13 }
 0x10f   : > { %582 = vrot.lane.b32.xlu1 %v1452_v29, %s1299_s13  ;;  %570 = vrot.lane.b32.xlu0 %v1443_v26, %s1299_s13 }
 0x113   : > { %586 = vrot.lane.b32.xlu1 %v1465_v34, %s1299_s13  ;;  %584 = vrot.lane.b32.xlu0 %v1462_v33, %s1299_s13 }
 0x115   : > { %v390_v36 = vpop.permute.xlu1 %389  ;;  %v388_v37 = vpop.permute.xlu0 %387 }
 0x116   : > { %v407_v38 = vsel %vm405_vm1, %v388_v37, %v390_v36 }
 0x117   : > { %580 = vrot.lane.b32.xlu1 %v1455_v30, %s1299_s13  ;;  %588 = vrot.lane.b32.xlu0 %v1474_v35, %s1299_s13  ;;  %s1201_s13 = sshll.u32 %s1303_s12, 4  ;;  %s1202_s13 = int_to_ptr.vmem [resolvable:$false] %s1201_s13 }
 0x118   : > { %720 = vmatprep.subr.bf16.mxu0 %v407_v38  ;;  %p1204_p6 = scmp.lt.s32.totalorder %s1658_s19, %s1202_s13 }
 0x119   : > { %v394_v39 = vpop.permute.xlu1 %393  ;;  %v392_v40 = vpop.permute.xlu0 %391 }
 0x11a   : > { %v409_v41 = vsel %vm405_vm1, %v392_v40, %v394_v39  ;;  %v408_v42 = vsel %vm405_vm1, %v390_v36, %v392_v40 }
 0x11b   : > { %611 = vrot.lane.b32.xlu1 %v1438_v23, %s1300_s14  ;;  %609 = vrot.lane.b32.xlu0 %v1435_v22, %s1300_s14 }
 0x11c   : > { %806 = vmatprep.subr.bf16.mxu1 %v409_v41 }
 0x11d   : > { %807 = vmatpush1.bf16.msra.mxu1 %v408_v42  ;;  %v398_v43 = vpop.permute.xlu1 %397  ;;  %v386_v44 = vpop.permute.xlu0 %385 }
 0x11e   : > { %v406_v45 = vsel %vm405_vm1, %v386_v44, %v388_v37 }
 0x11f   : > { %615 = vrot.lane.b32.xlu1 %v1446_v27, %s1300_s14  ;;  %613 = vrot.lane.b32.xlu0 %v1431_v20, %s1300_s14 }
 0x120   : > { %721 = vmatpush1.bf16.msra.mxu0 %v406_v45 }
 0x121   : > { %v402_v46 = vpop.permute.xlu1 %401  ;;  %v400_v47 = vpop.permute.xlu0 %399 }
 0x122   : > { %v411_v48 = vsel %vm405_vm1, %v398_v43, %v400_v47  ;;  %v412_v54 = vsel %vm405_vm1, %v400_v47, %v402_v46 }
 0x123   : > { %619 = vrot.lane.b32.xlu1 %v1452_v29, %s1300_s14  ;;  %607 = vrot.lane.b32.xlu0 %v1443_v26, %s1300_s14 }
 0x124   : > { %722 = vmatprep.subr.bf16.mxu0 %v411_v48 }
 0x125   : > { %v396_v49 = vpop.permute.xlu1 %395  ;;  %v404_v50 = vpop.permute.xlu0 %403 }
 0x126   : > { %v410_v51 = vsel %vm405_vm1, %v396_v49, %v398_v43  ;;  %v413_v52 = vsel %vm405_vm1, %v402_v46, %v404_v50 }
 0x127   : > { %623 = vrot.lane.b32.xlu1 %v1465_v34, %s1300_s14  ;;  %621 = vrot.lane.b32.xlu0 %v1462_v33, %s1300_s14 }
 0x128   : > { %723 = vmatpush1.bf16.msra.mxu0 %v410_v51  ;;  %808 = vmatprep.subr.bf16.mxu1 %v413_v52 }
 0x129   : > { %809 = vmatpush1.bf16.msra.mxu1 %v412_v54  ;;  %v427_v55 = vpop.permute.xlu1 %426  ;;  %v425_v56 = vpop.permute.xlu0 %424 }
 0x12a   : > { %v444_v57 = vsel %vm442_vm2, %v425_v56, %v427_v55 }
 0x12b   : > { %617 = vrot.lane.b32.xlu1 %v1455_v30, %s1300_s14  ;;  %625 = vrot.lane.b32.xlu0 %v1474_v35, %s1300_s14  ;;  %s1203_s14 = scalar_lea.vmem %s1202_s13, 2048 }
 0x12c   : > { %724 = vmatprep.subr.bf16.mxu0 %v444_v57  ;;  %p1205_p7 = scmp.lt.s32.totalorder %s1203_s14, %s1197_s11 }
 0x12d   : > { %v431_v58 = vpop.permute.xlu1 %430  ;;  %v429_v59 = vpop.permute.xlu0 %428 }
 0x12e   : > { %v446_v60 = vsel %vm442_vm2, %v429_v59, %v431_v58  ;;  %v445_v61 = vsel %vm442_vm2, %v427_v55, %v429_v59  ;;  %p1206_p10 = por %p1205_p7, %p1204_p6 }
 0x12f   : > { %648 = vrot.lane.b32.xlu1 %v1438_v23, %s1301_s27  ;;  %646 = vrot.lane.b32.xlu0 %v1435_v22, %s1301_s27 }
 0x130   : > { %810 = vmatprep.subr.bf16.mxu1 %v446_v60  ;;  %p1207_p11 = pnand %p1206_p10, %p1200_p5 }
 0x131   : > { %811 = vmatpush1.bf16.msra.mxu1 %v445_v61  ;;  %v435_v62 = vpop.permute.xlu1 %434  ;;  %v423_v63 = vpop.permute.xlu0 %422 }
 0x132   : > { %v443_v0 = vsel %vm442_vm2, %v423_v63, %v425_v56 }
 0x133   : > { %652 = vrot.lane.b32.xlu1 %v1446_v27, %s1301_s27  ;;  %650 = vrot.lane.b32.xlu0 %v1431_v20, %s1301_s27 }
 0x134   : > { %725 = vmatpush1.bf16.msra.mxu0 %v443_v0 }
 0x135   : > { %v439_v1 = vpop.permute.xlu1 %438  ;;  %v437_v2 = vpop.permute.xlu0 %436 }
 0x136   : > { %v448_v4 = vsel %vm442_vm2, %v435_v62, %v437_v2  ;;  %v449_v9 = vsel %vm442_vm2, %v437_v2, %v439_v1 }
 0x137   : > { %656 = vrot.lane.b32.xlu1 %v1452_v29, %s1301_s27  ;;  %644 = vrot.lane.b32.xlu0 %v1443_v26, %s1301_s27 }
 0x138   : > { %726 = vmatprep.subr.bf16.mxu0 %v448_v4 }
 0x139   : > { %v433_v5 = vpop.permute.xlu1 %432  ;;  %v441_v6 = vpop.permute.xlu0 %440 }
 0x13a   : > { %v447_v7 = vsel %vm442_vm2, %v433_v5, %v435_v62  ;;  %v450_v8 = vsel %vm442_vm2, %v439_v1, %v441_v6 }
 0x13b   : > { %660 = vrot.lane.b32.xlu1 %v1465_v34, %s1301_s27  ;;  %658 = vrot.lane.b32.xlu0 %v1462_v33, %s1301_s27 }
 0x13c   : > { %727 = vmatpush1.bf16.msra.mxu0 %v447_v7  ;;  %812 = vmatprep.subr.bf16.mxu1 %v450_v8 }
 0x13d   : > { %813 = vmatpush1.bf16.msra.mxu1 %v449_v9  ;;  %v464_v10 = vpop.permute.xlu1 %463  ;;  %v462_v11 = vpop.permute.xlu0 %461 }
 0x13e   : > { %v481_v12 = vsel %vm479_vm3, %v462_v11, %v464_v10 }
 0x13f   : > { %654 = vrot.lane.b32.xlu1 %v1455_v30, %s1301_s27  ;;  %662 = vrot.lane.b32.xlu0 %v1474_v35, %s1301_s27  ;;  %s1653_s27 = sadd.s32 %s1073_s24, %s1072_s23 }
 0x140   : > { %728 = vmatprep.subr.bf16.mxu0 %v481_v12  ;;  %s1074_s5 = sshll.u32 %s1653_s27, 7 }
 0x141   : > { %v468_v14 = vpop.permute.xlu1 %467  ;;  %v466_v15 = vpop.permute.xlu0 %465  ;;  %s1663_s9 = scalar_lea.hbm %s1723_s4, %s1074_s5 }
 0x142   : > { %v483_v17 = vsel %vm479_vm3, %v466_v15, %v468_v14  ;;  %v482_v18 = vsel %vm479_vm3, %v464_v10, %v466_v15 }
 0x143   : > { %814 = vmatprep.subr.bf16.mxu1 %v483_v17  ;;  %689 = vperm.xlu0 %1177, %v685_v13  }
 0x144   : > { %815 = vmatpush1.bf16.msra.mxu1 %v482_v18  ;;  %694 = vperm.xlu1 %1178, %v686_v16  }
 0x145   : > { %v472_v19 = vpop.permute.xlu1 %471  ;;  %v460_v20 = vpop.permute.xlu0 %459 }
 0x146   : > { %v480_v21 = vsel %vm479_vm3, %v460_v20, %v462_v11 }
 0x147   : > { %729 = vmatpush1.bf16.msra.mxu0 %v480_v21 }
 0x149   : > { %v476_v22 = vpop.permute.xlu1 %475  ;;  %v474_v23 = vpop.permute.xlu0 %473 }
 0x14a   : > { %v485_v24 = vsel %vm479_vm3, %v472_v19, %v474_v23  ;;  %v486_v29 = vsel %vm479_vm3, %v474_v23, %v476_v22 }
 0x14b   : > { %730 = vmatprep.subr.bf16.mxu0 %v485_v24 }
 0x14d   : > { %v470_v25 = vpop.permute.xlu1 %469  ;;  %v478_v26 = vpop.permute.xlu0 %477 }
 0x14e   : > { %v484_v27 = vsel %vm479_vm3, %v470_v25, %v472_v19  ;;  %v487_v28 = vsel %vm479_vm3, %v476_v22, %v478_v26 }
 0x14f   : > { %731 = vmatpush1.bf16.msra.mxu0 %v484_v27  ;;  %816 = vmatprep.subr.bf16.mxu1 %v487_v28 }
 0x150   : > { %817 = vmatpush1.bf16.msra.mxu1 %v486_v29 }
 0x151   : > { %v501_v30 = vpop.permute.xlu1 %500  ;;  %v499_v31 = vpop.permute.xlu0 %498 }
 0x152   : > { %v518_v32 = vsel %vm516_vm4, %v499_v31, %v501_v30 }
 0x153   : > { %732 = vmatprep.subr.bf16.mxu0 %v518_v32 }
 0x155   : > { %v505_v33 = vpop.permute.xlu1 %504  ;;  %v503_v34 = vpop.permute.xlu0 %502 }
 0x156   : > { %v520_v35 = vsel %vm516_vm4, %v503_v34, %v505_v33  ;;  %v519_v36 = vsel %vm516_vm4, %v501_v30, %v503_v34 }
 0x157   : > { %818 = vmatprep.subr.bf16.mxu1 %v520_v35 }
 0x158   : > { %819 = vmatpush1.bf16.msra.mxu1 %v519_v36 }
 0x159   : > { %v509_v37 = vpop.permute.xlu1 %508  ;;  %v497_v38 = vpop.permute.xlu0 %496 }
 0x15a   : > { %v517_v39 = vsel %vm516_vm4, %v497_v38, %v499_v31 }
 0x15b   : > { %733 = vmatpush1.bf16.msra.mxu0 %v517_v39  ;;  %v1193_v39 = vld [vmem:[%s1721_s2] ss:$12 sps:$4 sm:$0xff]  }
 0x15d   : > { %v513_v40 = vpop.permute.xlu1 %512  ;;  %v511_v41 = vpop.permute.xlu0 %510 }
 0x15e   : > { %v522_v42 = vsel %vm516_vm4, %v509_v37, %v511_v41  ;;  %v523_v47 = vsel %vm516_vm4, %v511_v41, %v513_v40 }
 0x15f   : > { %734 = vmatprep.subr.bf16.mxu0 %v522_v42 }
 0x161   : > { %v507_v43 = vpop.permute.xlu1 %506  ;;  %v515_v44 = vpop.permute.xlu0 %514 }
 0x162   : > { %v521_v45 = vsel %vm516_vm4, %v507_v43, %v509_v37  ;;  %v524_v46 = vsel %vm516_vm4, %v513_v40, %v515_v44 }
 0x163   : > { %735 = vmatpush1.bf16.msra.mxu0 %v521_v45  ;;  %820 = vmatprep.subr.bf16.mxu1 %v524_v46 }
 0x164   : > { %821 = vmatpush1.bf16.msra.mxu1 %v523_v47 }
 0x165   : > { %v538_v48 = vpop.permute.xlu1 %537  ;;  %v536_v49 = vpop.permute.xlu0 %535 }
 0x166   : > { %v555_v50 = vsel %vm553_vm5, %v536_v49, %v538_v48 }
 0x167   : > { %736 = vmatprep.subr.bf16.mxu0 %v555_v50 }
 0x169   : > { %v542_v51 = vpop.permute.xlu1 %541  ;;  %v540_v52 = vpop.permute.xlu0 %539 }
 0x16a   : > { %v557_v53 = vsel %vm553_vm5, %v540_v52, %v542_v51  ;;  %v556_v54 = vsel %vm553_vm5, %v538_v48, %v540_v52 }
 0x16b   : > { %822 = vmatprep.subr.bf16.mxu1 %v557_v53 }
 0x16c   : > { %823 = vmatpush1.bf16.msra.mxu1 %v556_v54 }
 0x16d   : > { %v546_v55 = vpop.permute.xlu1 %545  ;;  %v534_v56 = vpop.permute.xlu0 %533 }
 0x16e   : > { %v554_v57 = vsel %vm553_vm5, %v534_v56, %v536_v49  ;;  %v1196_v56 = vld [vmem:[%s1721_s2 + $0x8] ss:$12 sps:$4 sm:$0xff]  }
 0x16f   : > { %737 = vmatpush1.bf16.msra.mxu0 %v554_v57 }
 0x171   : > { %v550_v58 = vpop.permute.xlu1 %549  ;;  %v548_v59 = vpop.permute.xlu0 %547 }
 0x172   : > { %v559_v60 = vsel %vm553_vm5, %v546_v55, %v548_v59  ;;  %v560_v1 = vsel %vm553_vm5, %v548_v59, %v550_v58 }
 0x173   : > { %738 = vmatprep.subr.bf16.mxu0 %v559_v60 }
 0x175   : > { %v544_v61 = vpop.permute.xlu1 %543  ;;  %v552_v62 = vpop.permute.xlu0 %551 }
 0x176   : > { %v558_v63 = vsel %vm553_vm5, %v544_v61, %v546_v55  ;;  %v561_v0 = vsel %vm553_vm5, %v550_v58, %v552_v62 }
 0x177   : > { %739 = vmatpush1.bf16.msra.mxu0 %v558_v63  ;;  %824 = vmatprep.subr.bf16.mxu1 %v561_v0 }
 0x178   : > { %825 = vmatpush1.bf16.msra.mxu1 %v560_v1 }
 0x179   : > { %v575_v2 = vpop.permute.xlu1 %574  ;;  %v573_v4 = vpop.permute.xlu0 %572 }
 0x17a   : > { %v592_v5 = vsel %vm590_vm6, %v573_v4, %v575_v2 }
 0x17b   : > { %740 = vmatprep.subr.bf16.mxu0 %v592_v5 }
 0x17d   : > { %v579_v6 = vpop.permute.xlu1 %578  ;;  %v577_v7 = vpop.permute.xlu0 %576 }
 0x17e   : > { %v594_v8 = vsel %vm590_vm6, %v577_v7, %v579_v6  ;;  %v593_v9 = vsel %vm590_vm6, %v575_v2, %v577_v7 }
 0x17f   : > { %826 = vmatprep.subr.bf16.mxu1 %v594_v8 }
 0x180   : > { %827 = vmatpush1.bf16.msra.mxu1 %v593_v9 }
 0x181   : > { %v583_v10 = vpop.permute.xlu1 %582  ;;  %v571_v11 = vpop.permute.xlu0 %570 }
 0x182   : > { %v591_v12 = vsel %vm590_vm6, %v571_v11, %v573_v4 }
 0x183   : > { %741 = vmatpush1.bf16.msra.mxu0 %v591_v12 }
 0x185   : > { %v587_v13 = vpop.permute.xlu1 %586  ;;  %v585_v14 = vpop.permute.xlu0 %584 }
 0x186   : > { %v596_v15 = vsel %vm590_vm6, %v583_v10, %v585_v14  ;;  %v597_v20 = vsel %vm590_vm6, %v585_v14, %v587_v13 }
 0x187   : > { %742 = vmatprep.subr.bf16.mxu0 %v596_v15 }
 0x189   : > { %v581_v16 = vpop.permute.xlu1 %580  ;;  %v589_v17 = vpop.permute.xlu0 %588 }
 0x18a   : > { %v595_v18 = vsel %vm590_vm6, %v581_v16, %v583_v10  ;;  %v598_v19 = vsel %vm590_vm6, %v587_v13, %v589_v17 }
 0x18b   : > { %743 = vmatpush1.bf16.msra.mxu0 %v595_v18  ;;  %828 = vmatprep.subr.bf16.mxu1 %v598_v19 }
 0x18c   : > { %829 = vmatpush1.bf16.msra.mxu1 %v597_v20 }
 0x18d   : > { %v612_v21 = vpop.permute.xlu1 %611  ;;  %v610_v22 = vpop.permute.xlu0 %609 }
 0x18e   : > { %v629_v23 = vsel %vm627_vm7, %v610_v22, %v612_v21 }
 0x18f   : > { %744 = vmatprep.subr.bf16.mxu0 %v629_v23 }
 0x191   : > { %v616_v24 = vpop.permute.xlu1 %615  ;;  %v614_v25 = vpop.permute.xlu0 %613 }
 0x192   : > { %v631_v26 = vsel %vm627_vm7, %v614_v25, %v616_v24  ;;  %v630_v27 = vsel %vm627_vm7, %v612_v21, %v614_v25 }
 0x193   : > { %830 = vmatprep.subr.bf16.mxu1 %v631_v26 }
 0x194   : > { %831 = vmatpush1.bf16.msra.mxu1 %v630_v27 }
 0x195   : > { %v620_v28 = vpop.permute.xlu1 %619  ;;  %v608_v29 = vpop.permute.xlu0 %607 }
 0x196   : > { %v628_v30 = vsel %vm627_vm7, %v608_v29, %v610_v22 }
 0x197   : > { %745 = vmatpush1.bf16.msra.mxu0 %v628_v30 }
 0x199   : > { %v624_v31 = vpop.permute.xlu1 %623  ;;  %v622_v32 = vpop.permute.xlu0 %621 }
 0x19a   : > { %v633_v33 = vsel %vm627_vm7, %v620_v28, %v622_v32  ;;  %v634_v38 = vsel %vm627_vm7, %v622_v32, %v624_v31 }
 0x19b   : > { %746 = vmatprep.subr.bf16.mxu0 %v633_v33 }
 0x19d   : > { %v618_v34 = vpop.permute.xlu1 %617  ;;  %v626_v35 = vpop.permute.xlu0 %625 }
 0x19e   : > { %v632_v36 = vsel %vm627_vm7, %v618_v34, %v620_v28  ;;  %v635_v37 = vsel %vm627_vm7, %v624_v31, %v626_v35 }
 0x19f   : > { %747 = vmatpush1.bf16.msra.mxu0 %v632_v36  ;;  %832 = vmatprep.subr.bf16.mxu1 %v635_v37 }
 0x1a0   : > { %833 = vmatpush1.bf16.msra.mxu1 %v634_v38 }
 0x1a1   : > { %v649_v40 = vpop.permute.xlu1 %648  ;;  %v647_v41 = vpop.permute.xlu0 %646 }
 0x1a2   : > { %v666_v42 = vsel %vm664_vm8, %v647_v41, %v649_v40  ;;  %749 = vmatmul.mubr.bf16.vlgmr.msra.gmra.mrb[0].mxu0 %v1193_v39 }
 0x1a3   : > { %759 = vmatprep.subr.bf16.mxu0 %v666_v42  ;;  %835 = vmatmul.mubr.bf16.vlgmr.msra.gmra.mrb[0].mxu1 %v1193_v39 }
 0x1a4   : > { %791 = vmatprep.mubr.bf16.mxu0 %v1302_v3  ;;  %877 = vmatprep.mubr.bf16.mxu1 %v1302_v3 }
 0x1a5   : > { %v653_v43 = vpop.permute.xlu1 %652  ;;  %v651_v44 = vpop.permute.xlu0 %650 }
 0x1a6   : > { %v667_v45 = vsel %vm664_vm8, %v649_v40, %v651_v44  ;;  %v668_v46 = vsel %vm664_vm8, %v651_v44, %v653_v43 }
 0x1a7   : > { %845 = vmatprep.subr.bf16.mxu1 %v668_v46 }
 0x1a8   : > { %846 = vmatpush1.bf16.msra.mxu1 %v667_v45 }
 0x1a9   : > { %v657_v47 = vpop.permute.xlu1 %656  ;;  %v645_v48 = vpop.permute.xlu0 %644 }
 0x1aa   : > { %v665_v49 = vsel %vm664_vm8, %v645_v48, %v647_v41 }
 0x1ab   : > { %760 = vmatpush1.bf16.msra.mxu0 %v665_v49 }
 0x1ad   : > { %v661_v50 = vpop.permute.xlu1 %660  ;;  %v659_v51 = vpop.permute.xlu0 %658 }
 0x1ae   : > { %v670_v52 = vsel %vm664_vm8, %v657_v47, %v659_v51  ;;  %v671_v57 = vsel %vm664_vm8, %v659_v51, %v661_v50 }
 0x1af   : > { %761 = vmatprep.subr.bf16.mxu0 %v670_v52 }
 0x1b1   : > { %v655_v3 = vpop.permute.xlu1 %654  ;;  %v663_v53 = vpop.permute.xlu0 %662 }
 0x1b2   : > { %v669_v54 = vsel %vm664_vm8, %v655_v3, %v657_v47  ;;  %v672_v55 = vsel %vm664_vm8, %v661_v50, %v663_v53 }
 0x1b3   : > { %762 = vmatpush1.bf16.msra.mxu0 %v669_v54  ;;  %847 = vmatprep.subr.bf16.mxu1 %v672_v55 }
 0x1b4   : > { %848 = vmatpush1.bf16.msra.mxu1 %v671_v57 }
 0x1b6   : > { %1069 = vmatmul.mubr.msk.bf16.vlgmr.msra.gmra.mrb[0].mxu0 %vm712_vm9, %v1196_v56 }
 0x1b7   : > { %1070 = vmatmul.mubr.msk.bf16.vlgmr.msra.gmra.mrb[0].mxu1 %vm712_vm9, %v1196_v56 }
 0x1c2   : > { %v690_v58 = vpop.permute.xlu0 %689 }
 0x1c3   : > { %v695_v60 = vpop.permute.xlu1 %694 }
 0x289   : > { %v793_v59 = vpop.f32.mrb[0].mxu0 }
 0x28a   : > { %v1077_v61 = vadd.f32 %v793_v59, %v690_v58  ;;  %v795_v62 = vpop.f32.mrb[1].mxu0  ;;  %v879_v63 = vpop.f32.mrb[0].mxu1 }
 0x28b   : > { %v1078_v0 = vadd.f32 %v795_v62, %v690_v58  ;;  %v1081_v1 = vadd.f32 %v879_v63, %v690_v58  ;;  %v797_v2 = vpop.f32.mrb[2].mxu0  ;;  %v881_v4 = vpop.f32.mrb[1].mxu1 }
 0x28c   : > { %vm888_vm10 = vcmp.ge.f32.partialorder %v1077_v61, 0.0  ;;  %v896_v5 = vmul.f32 0.2, %v1077_v61  ;;  %v1079_v6 = vadd.f32 %v797_v2, %v695_v60  ;;  %v1082_v7 = vadd.f32 %v881_v4, %v690_v58  ;;  %v799_v8 = vpop.f32.mrb[3].mxu0  ;;  %v883_v9 = vpop.f32.mrb[2].mxu1 }
 0x28d   : > { %vm889_vm11 = vcmp.ge.f32.partialorder %v1078_v0, 0.0  ;;  %v897_v10 = vmul.f32 0.2, %v1078_v0  ;;  %vm890_vm12 = vcmp.ge.f32.partialorder %v1081_v1, 0.0  ;;  %v898_v11 = vmul.f32 0.2, %v1081_v1 }
 0x28e   : > { %v904_v12 = vsel %vm888_vm10, %v1077_v61, %v896_v5  ;;  %vm892_vm13 = vcmp.ge.f32.partialorder %v1079_v6, 0.0  ;;  %v900_v13 = vmul.f32 0.2, %v1079_v6  ;;  %vm891_vm14 = vcmp.ge.f32.partialorder %v1082_v7, 0.0  ;;  %v885_v14 = vpop.f32.mrb[3].mxu1 }
 0x28f   : > { %912 = vst [vmem:[%s272_s18] sm:$0xff] %v904_v12  ;;  %v905_v15 = vsel %vm889_vm11, %v1078_v0, %v897_v10  ;;  %v906_v16 = vsel %vm890_vm12, %v1081_v1, %v898_v11  ;;  %v899_v17 = vmul.f32 0.2, %v1082_v7  ;;  %v1080_v18 = vadd.f32 %v799_v8, %v695_v60 }
 0x290   : > { %913 = vst [vmem:[%s272_s18 + $0x8] sm:$0xff] %v905_v15  ;;  %914 = vst [vmem:[%s272_s18 + $0x10] sm:$0xff] %v906_v16  ;;  %v908_v19 = vsel %vm892_vm13, %v1079_v6, %v900_v13  ;;  %v1083_v20 = vadd.f32 %v883_v9, %v695_v60  ;;  %v1084_v21 = vadd.f32 %v885_v14, %v695_v60 }
 0x291   : > { %916 = vst [vmem:[%s272_s18 + $0x20] sm:$0xff] %v908_v19  ;;  %v907_v22 = vsel %vm891_vm14, %v1082_v7, %v899_v17  ;;  %vm893_vm15 = vcmp.ge.f32.partialorder %v1080_v18, 0.0  ;;  %v901_v23 = vmul.f32 0.2, %v1080_v18 }
 0x292   : > { %915 = vst [vmem:[%s272_s18 + $0x18] sm:$0xff] %v907_v22  ;;  %vm894_vm0 = vcmp.ge.f32.partialorder %v1083_v20, 0.0  ;;  %v902_v24 = vmul.f32 0.2, %v1083_v20  ;;  %vm895_vm1 = vcmp.ge.f32.partialorder %v1084_v21, 0.0 }
 0x293   : > { %v903_v25 = vmul.f32 0.2, %v1084_v21  ;;  %v909_v26 = vsel %vm893_vm15, %v1080_v18, %v901_v23 }
 0x294   : > { %917 = vst [vmem:[%s272_s18 + $0x28] sm:$0xff] %v909_v26  ;;  %v910_v27 = vsel %vm894_vm0, %v1083_v20, %v902_v24 }
 0x295   : > { %v911_v28 = vsel %vm895_vm1, %v1084_v21, %v903_v25  ;;  %918 = vst [vmem:[%s272_s18 + $0x30] sm:$0xff] %v910_v27 }
 0x296   : > { %919 = vst [vmem:[%s272_s18 + $0x38] sm:$0xff] %v911_v28 }
 0x297   : > { %1210 = shalt.err (!%p1207_p11)
}
 0x298   : > { %s1211_s28 = scalar_lea.hbm %s1663_s9, 1024  ;;  %s1215_s27 = scalar_lea.hbm %s1723_s4, 8192 }
 0x299   : > { %p1212_p12 = scmp.ne.s32.totalorder %s1663_s9, %s1211_s28  ;;  %p1216_p1 = scmp.lt.u32.totalorder %s1663_s9, %s1723_s4 }
 0x29a   : > { %p1217_p2 = scmp.lt.u32.totalorder %s1215_s27, %s1211_s28  ;;  %p1219_p4 = scmp.lt.u32.totalorder %s1211_s28, %s1663_s9 }
 0x29b   : > { %p1213_p13 = pnand %p1212_p12, %p1392_p8 }
 0x29c   : > { %p1218_p3 = por %p1217_p2, %p1216_p1 }
 0x29d   : > { %p1214_p0 = pneg %p1213_p13 }
 0x29e   : > { %p1220_p5 = por %p1219_p4, %p1218_p3 }
 0x2a0   : > { %p1221_p6 = pnand %p1220_p5, %p1214_p0 }
 0x2a2   : > { %1224 = shalt.err (!%p1221_p6)
}
 0x2a3   : > { %s1304_s6 = smov 512   ;;  %s1305_s7 = smov 2048  }
 0x2a4   : > { %s1306_s11 = smov 32  }
 0x2a5   : > { %1093 = dma.vmem_to_hbm [thread:$0]  (%p1392_p8), %s1658_s19, 1024, %s1663_s9, %s1667_s10, %s1304_s6, %s1305_s7, %s1306_s11  }
 0x2a6 PF: > { %p1099_p7 = scmp.ge.s32.totalorder %s1291_s22, 2  ;;  %s951_s12 = sand.u32 1, %s1263_s15  }
 0x2a7   : > { %s952_s13 = scalar_lea.sflag [#allocation4], %s951_s12 }
 0x2a8   : > { %p1096_p10 = pnand %p1099_p7, %p1396_p9 }
 0x2aa   : > { %1258 = dma.done.wait (!%p1096_p10), %s952_s13, 1024  }
 0x2ab   : > { %1260 = vsyncadd (!%p1096_p10), %s952_s13, 4294966272  ;;  %s17_s22 = sadd.s32 1, %s1291_s22   ;;  %s1727_s15 = smov %s1267_s16 }
 0x2ac   : > { %p14_p11 = scmp.ge.s32.totalorder %s17_s22, 10   ;;  %s1728_s16 = smov %s1271_s17 }
 0x2ad   : > { %s1729_s17 = smov %s1404_s8  ;;  %s1730_s18 = smov %s1283_s20 }
 0x2ae   : > { %s1731_s19 = smov %s1287_s21  ;;  %s1732_s20 = smov %s1735_s25 }
 0x2af   : > { %s1733_s21 = smov %s1739_s26  ;;  %16 = sbr.rel (!%p14_p11) target bundleno = 5 (0x5), region = 102 }
 0x2b6   :  { %957 = vsyncpa [#allocation4], 1 }
 0x2b7   :  { %959 = vsyncpa [#allocation4 + $0x1], 1 }

</bundles_post_ra>
